<compile_context>
chip_gen: v7x
topology: tpu7x:2x2x1
jax: 0.10.0
libtpu: 0.0.40
codegen_flags: <defaults>
</compile_context>

<pallas_src>
import jax
import jax.numpy as jnp
from jax.experimental import pallas as pl
from jax.experimental.pallas import tpu as pltpu

N_HIDDEN = 32   # Config.cfg.hyper.n_hidden (synthetic)
N_MID = 64      # linear3 out_features / BN features
BATCH = 8
BN_EPS = 1e-5


def now_block_kernel(x_ref, packed_ref, b4_ref, out_ref):
    x = x_ref[...]                                         # (B, n_hidden)

    # Static row-slices of the packed parameter slab (zero-cost ref views + loads).
    w3 = packed_ref[0:N_HIDDEN, :]                         # (n_hidden, 64)
    gamma = packed_ref[N_HIDDEN:N_HIDDEN + 1, :]           # (1, 64)
    beta = packed_ref[N_HIDDEN + 1:N_HIDDEN + 2, :]        # (1, 64)
    w4t = packed_ref[N_HIDDEN + 2:N_HIDDEN + 3, :]         # (1, 64)

    # linear3 WITHOUT bias: train-mode BatchNorm subtracts the per-feature bias
    # right back out, so it is mathematically a no-op here.
    h = jnp.dot(x, w3, preferred_element_type=jnp.float32)  # (B, 64)  MXU

    # One-pass batch moments (biased variance, matching BN training mode).
    mean = jnp.mean(h, axis=0, keepdims=True)               # (1, 64) sublane reduce
    mean_sq = jnp.mean(h * h, axis=0, keepdims=True)        # (1, 64) independent reduce
    var = jnp.maximum(mean_sq - mean * mean, 0.0)

    # Fold BN into a single scale/shift (rsqrt goes to the EUP slot).
    scale = gamma * jax.lax.rsqrt(var + BN_EPS)              # (1, 64)
    shift = beta - mean * scale                              # (1, 64)
    h_act = jnp.maximum(h * scale + shift, 0.0)              # (B, 64)  ReLU

    # linear4 as VPU mul + lane reduction instead of an N=1 MXU matmul.
    b4 = b4_ref[0, 0]                                        # SMEM scalar
    y = jnp.sum(h_act * w4t, axis=-1, keepdims=True) + b4    # (B, 1)
    out_ref[...] = jnp.maximum(y, 0.0)                       # final ReLU


def now_block(x, packed_params, b4):
    """x: (B, n_hidden) f32; packed_params: (n_hidden+3, 64) = [w3; gamma; beta; w4^T];
    b4: (1, 1). Returns (B, 1) f32."""
    B = x.shape[0]
    vmem = pl.BlockSpec(memory_space=pltpu.MemorySpace.VMEM)
    smem = pl.BlockSpec(memory_space=pltpu.MemorySpace.SMEM)

    flops = 2 * B * N_HIDDEN * N_MID + 10 * B * N_MID   # matmul + BN/ReLU/reduce elementwise
    bytes_accessed = 4 * (x.size + packed_params.size + b4.size + B)
    cost = pl.CostEstimate(flops=flops, transcendentals=N_MID,
                           bytes_accessed=bytes_accessed)

    # TODO(synk): if this block is called once per micro-batch inside a larger
    # loop, hoist to a single pallas_call with grid=(B_total//tb,) and a
    # VMEM-resident weight BlockSpec to amortize launch/DMA overhead.
    return pl.pallas_call(
        now_block_kernel,
        out_shape=jax.ShapeDtypeStruct((B, 1), jnp.float32),
        in_specs=[vmem, vmem, smem],
        out_specs=vmem,
        cost_estimate=cost,
    )(x, packed_params, b4)


def init_params(key):
    """Deterministic init mirroring nn.Linear / nn.BatchNorm1d defaults."""
    k3w, k3b, k4w, k4b = jax.random.split(key, 4)

    bound3 = 1.0 / jnp.sqrt(jnp.float32(N_HIDDEN))
    # stored transposed: (in, out)
    w3 = jax.random.uniform(k3w, (N_HIDDEN, N_MID), jnp.float32, -bound3, bound3)
    b3 = jax.random.uniform(k3b, (1, N_MID), jnp.float32, -bound3, bound3)

    bound4 = 1.0 / jnp.sqrt(jnp.float32(N_MID))
    w4 = jax.random.uniform(k4w, (N_MID, 1), jnp.float32, -bound4, bound4)
    b4 = jax.random.uniform(k4b, (1, 1), jnp.float32, -bound4, bound4)

    gamma = jnp.ones((1, N_MID), jnp.float32)   # BatchNorm1d weight
    beta = jnp.zeros((1, N_MID), jnp.float32)   # BatchNorm1d bias
    return w3, b3, gamma, beta, w4, b4


def reference(x, w3, b3, gamma, beta, w4, b4):
    # Full PyTorch-faithful forward, INCLUDING b3 (the kernel omits it; BN
    # in training mode makes the output identical).
    h = x @ w3 + b3
    mean = jnp.mean(h, axis=0, keepdims=True)
    var = jnp.mean((h - mean) ** 2, axis=0, keepdims=True)
    h = jnp.maximum((h - mean) / jnp.sqrt(var + BN_EPS) * gamma + beta, 0.0)
    return jnp.maximum(h @ w4 + b4, 0.0)


if __name__ == "__main__":
    key = jax.random.PRNGKey(0)
    kx, kp = jax.random.split(key)
    x = jax.random.normal(kx, (BATCH, N_HIDDEN), jnp.float32)
    w3, b3, gamma, beta, w4, b4 = init_params(kp)

    # Pack everything per-feature into one VMEM slab: [w3; gamma; beta; w4^T].
    # In a real model this packing is done once at parameter-load time, not per call.
    packed_params = jnp.concatenate([w3, gamma, beta, w4.T], axis=0)  # (n_hidden+3, 64)

    out = now_block(x, packed_params, b4)
    out = jax.block_until_ready(out)

    ref = reference(x, w3, b3, gamma, beta, w4, b4)
    assert out.shape == (BATCH, 1)
    assert jnp.allclose(out, ref, atol=1e-4, rtol=1e-4), (out, ref)

    print("KERNEL_OK")
</pallas_src>

<mosaic_0001>
module attributes {stable_mosaic.version = 11 : i64} {
  func.func @now_block_kernel(%arg0: memref<8x32xf32, #tpu.memory_space<vmem>>, %arg1: memref<35x64xf32, #tpu.memory_space<vmem>>, %arg2: memref<1x1xf32, #tpu.memory_space<smem>>, %arg3: memref<8x1xf32, #tpu.memory_space<vmem>>) attributes {dimension_semantics = [], scalar_prefetch = 0 : i64, scratch_operands = 0 : i64, tpu.core_type = #tpu.core_type<tc>} {
    %c0 = arith.constant 0 : index
    %c0_0 = arith.constant 0 : index
    %0 = vector.load %arg0[%c0, %c0_0] : memref<8x32xf32, #tpu.memory_space<vmem>>, vector<8x32xf32>
    %c0_1 = arith.constant 0 : index
    %c0_2 = arith.constant 0 : index
    %1 = vector.load %arg1[%c0_1, %c0_2] : memref<35x64xf32, #tpu.memory_space<vmem>>, vector<32x64xf32>
    %c32 = arith.constant 32 : index
    %c0_3 = arith.constant 0 : index
    %2 = vector.load %arg1[%c32, %c0_3] : memref<35x64xf32, #tpu.memory_space<vmem>>, vector<1x64xf32>
    %c33 = arith.constant 33 : index
    %c0_4 = arith.constant 0 : index
    %3 = vector.load %arg1[%c33, %c0_4] : memref<35x64xf32, #tpu.memory_space<vmem>>, vector<1x64xf32>
    %c34 = arith.constant 34 : index
    %c0_5 = arith.constant 0 : index
    %4 = vector.load %arg1[%c34, %c0_5] : memref<35x64xf32, #tpu.memory_space<vmem>>, vector<1x64xf32>
    %cst = arith.constant dense<0.000000e+00> : vector<8x64xf32>
    %5 = tpu.matmul %0, %1, %cst {dimension_numbers = #tpu.dot_dimension_numbers<[1], [0], [0], [1], [0, 0, 1, 1], [], []>} : vector<8x32xf32>, vector<32x64xf32>, vector<8x64xf32> -> vector<8x64xf32>
    %cst_6 = arith.constant dense<0.000000e+00> : vector<64xf32>
    %6 = vector.multi_reduction <add>, %5, %cst_6 [0] : vector<8x64xf32> to vector<64xf32>
    %7 = vector.shape_cast %6 : vector<64xf32> to vector<1x64xf32>
    %cst_7 = arith.constant 8.000000e+00 : f32
    %8 = vector.broadcast %cst_7 : f32 to vector<1x64xf32>
    %9 = arith.divf %7, %8 : vector<1x64xf32>
    %10 = arith.mulf %5, %5 : vector<8x64xf32>
    %cst_8 = arith.constant dense<0.000000e+00> : vector<64xf32>
    %11 = vector.multi_reduction <add>, %10, %cst_8 [0] : vector<8x64xf32> to vector<64xf32>
    %12 = vector.shape_cast %11 : vector<64xf32> to vector<1x64xf32>
    %cst_9 = arith.constant 8.000000e+00 : f32
    %13 = vector.broadcast %cst_9 : f32 to vector<1x64xf32>
    %14 = arith.divf %12, %13 : vector<1x64xf32>
    %15 = arith.mulf %9, %9 : vector<1x64xf32>
    %16 = arith.subf %14, %15 : vector<1x64xf32>
    %cst_10 = arith.constant 0.000000e+00 : f32
    %17 = vector.broadcast %cst_10 : f32 to vector<1x64xf32>
    %18 = arith.maximumf %16, %17 : vector<1x64xf32>
    %cst_11 = arith.constant 9.99999974E-6 : f32
    %19 = vector.broadcast %cst_11 : f32 to vector<1x64xf32>
    %20 = arith.addf %18, %19 : vector<1x64xf32>
    %21 = math.rsqrt %20 : vector<1x64xf32>
    %22 = arith.mulf %2, %21 : vector<1x64xf32>
    %23 = arith.mulf %9, %22 : vector<1x64xf32>
    %24 = arith.subf %3, %23 : vector<1x64xf32>
    %25 = vector.broadcast %22 : vector<1x64xf32> to vector<8x64xf32>
    %26 = arith.mulf %5, %25 : vector<8x64xf32>
    %27 = vector.broadcast %24 : vector<1x64xf32> to vector<8x64xf32>
    %28 = arith.addf %26, %27 : vector<8x64xf32>
    %cst_12 = arith.constant 0.000000e+00 : f32
    %29 = vector.broadcast %cst_12 : f32 to vector<8x64xf32>
    %30 = arith.maximumf %28, %29 : vector<8x64xf32>
    %c0_13 = arith.constant 0 : index
    %c0_14 = arith.constant 0 : index
    %31 = memref.load %arg2[%c0_13, %c0_14] : memref<1x1xf32, #tpu.memory_space<smem>>
    %32 = vector.broadcast %4 : vector<1x64xf32> to vector<8x64xf32>
    %33 = arith.mulf %30, %32 : vector<8x64xf32>
    %cst_15 = arith.constant dense<0.000000e+00> : vector<8xf32>
    %34 = vector.multi_reduction <add>, %33, %cst_15 [1] : vector<8x64xf32> to vector<8xf32>
    %35 = vector.shape_cast %34 : vector<8xf32> to vector<8x1xf32>
    %36 = vector.broadcast %31 : f32 to vector<8x1xf32>
    %37 = arith.addf %35, %36 : vector<8x1xf32>
    %cst_16 = arith.constant 0.000000e+00 : f32
    %38 = vector.broadcast %cst_16 : f32 to vector<8x1xf32>
    %39 = arith.maximumf %37, %38 : vector<8x1xf32>
    %c0_17 = arith.constant 0 : index
    %c0_18 = arith.constant 0 : index
    %40 = vector.load %arg3[%c0_17, %c0_18] : memref<8x1xf32, #tpu.memory_space<vmem>>, vector<8x1xf32>
    tpu.vector_store %arg3[%c0_17, %c0_18], %39 {strides = array<i32>} : memref<8x1xf32, #tpu.memory_space<vmem>>, vector<8x1xf32>,
    return
  }
}

</mosaic_0001>

<bundles_post_ra>
// kernel: tpu_custom_call.1
= control target key start
LH: loop header
LB: loop body
LE: loop exit
PB: predicated region body
PF: predicated region fallthrough
CT: control target
= control target key end

     0   :  { %9 = vsyncpa [#allocation4], 0  ;;  %s329_s0 = inlined_call_operand.hbm [shape: f32[8,32], index: 0, kind: input, shape index: {}]   ;;  %s330_s1 = inlined_call_operand.hbm [shape: f32[35,64], index: 1, kind: input, shape index: {}]   ;;  %s331_s2 = inlined_call_operand.<no memory space> [shape: f32[1,1], index: 2, kind: input, shape index: {}]   ;;  %s332_s3 = inlined_call_operand.vmem [shape: f32[8,1], index: 3, kind: output, shape index: {}]  }
   0x1   :  { %10 = vsyncpa [#allocation6], 0  ;;  %s262_s12 = smov [#allocation3]   ;;  %s263_s14 = smov [#allocation5]  }
   0x2   :  { %s17_s13 = sshll.u32 %s262_s12, 4  ;;  %s26_s15 = sshll.u32 %s263_s14, 4  ;;  %s18_s13 = int_to_ptr.vmem [resolvable:$true] %s17_s13  ;;  %s289_s15 = int_to_ptr.vmem [resolvable:$true] %s26_s15 }
   0x3   :  { %s214_s18 = scalar_lea.hbm %s329_s0, 128 }
   0x4   :  { %p215_p0 = scmp.ne.s32.totalorder %s329_s0, %s214_s18  ;;  %p218_p1 = scmp.lt.u32.totalorder %s214_s18, %s329_s0 }
   0x6   :  { %p220_p2 = pnand %p218_p1, %p215_p0 }
   0x8   :  { %223 = shalt.err (!%p220_p2)
}
   0x9   :  { %s224_s23 = scalar_lea.vmem %s18_s13, 128  ;;  %p229_p4 = scmp.lt.s32.totalorder %s18_s13, %s18_s13 }
   0xa   :  { %p225_p3 = scmp.ne.s32.totalorder %s18_s13, %s224_s23  ;;  %p230_p5 = scmp.lt.s32.totalorder %s224_s23, %s224_s23 }
   0xc   :  { %p231_p6 = por %p230_p5, %p229_p4 }
   0xe   :  { %p232_p7 = pnand %p231_p6, %p225_p3 }
  0x10   :  { %235 = shalt.err (!%p232_p7)
}
  0x11   :  { %20 = dma.hbm_to_vmem [thread:$0]  %s329_s0, 128, %s18_s13, [#allocation4]  }
  0x12   :  { %s236_s28 = scalar_lea.hbm %s330_s1, 640 }
  0x13   :  { %p237_p8 = scmp.ne.s32.totalorder %s330_s1, %s236_s28  ;;  %p240_p9 = scmp.lt.u32.totalorder %s236_s28, %s330_s1 }
  0x15   :  { %p242_p10 = pnand %p240_p9, %p237_p8 }
  0x17   :  { %245 = shalt.err (!%p242_p10)
}
  0x18   :  { %s246_s6 = scalar_lea.vmem %s289_s15, 640  ;;  %p251_p12 = scmp.lt.s32.totalorder %s289_s15, %s289_s15 }
  0x19   :  { %p247_p11 = scmp.ne.s32.totalorder %s289_s15, %s246_s6  ;;  %p252_p13 = scmp.lt.s32.totalorder %s246_s6, %s246_s6 }
  0x1b   :  { %p253_p0 = por %p252_p13, %p251_p12 }
  0x1d   :  { %p254_p1 = pnand %p253_p0, %p247_p11 }
  0x1f   :  { %257 = shalt.err (!%p254_p1)
}
  0x20   :  { %s264_s0 = smov 128   ;;  %s265_s7 = smov 8  }
  0x21   :  { %32 = dma.hbm_to_vmem [thread:$0]  %s330_s1, 640, %s289_s15, [#allocation6], %s264_s0, %s264_s0, %s265_s7  }
  0x22   :  { %258 = dma.done.wait [#allocation4], 128  }
  0x23   :  { %259 = vsyncadd [#allocation4], 4294967168 }
  0x24   :  { %260 = dma.done.wait [#allocation6], 640  }
  0x25   :  { %261 = vsyncadd [#allocation6], 4294966656  ;;  %v266_v0 = vmov 0.0|0.0   ;;  %vm267_vm0 = vmmov 0   ;;  %v268_v1 = vmov 0.0   ;;  %v42_v2 = vld [vmem:[#allocation5] sm:$0xff]  ;;  %v150_v32 = vlaneseq }
  0x26   :  { %199 = vmatprep.subr.bf16.mxu0 %v266_v0  ;;  %196 = vmatprep.mubr.msk.f32.mxu0 %vm267_vm0, %v268_v1  ;;  %v43_v3 = vld [vmem:[#allocation5 + $0x8] sm:$0xff]  ;;  %v44_v4 = vld [vmem:[#allocation5 + $0x10] sm:$0xff]  ;;  %v45_v6 = vld [vmem:[#allocation5 + $0x18] sm:$0xff]  ;;  %vm49_vm1 = vcmask 261120   ;;  %vm123_vm2 = vcmask 523264   ;;  %v170_v49 = vstv %s331_s2  ;;  %vm173_vm3 = vcmask 7168  }
  0x27   :  { %v200_v5 = vpack.c.bf16 %v43_v3, %v42_v2  ;;  %v203_v7 = vpack.c.bf16 %v45_v6, %v44_v4  ;;  %v41_v8 = vld [vmem:[#allocation3] sm:$0xff]  ;;  %v151_v33 = vshrl.u32 %v150_v32, 7  ;;  %v46_v34 = vld [vmem:[#allocation5 + $0x20] sm:$0x1]  ;;  %v47_v38 = vld [vmem:[#allocation5 + $0x21] sm:$0x1] }
  0x28   :  { %v182_v45 = vld [vmem:[#allocation5 + $0x22] ss:$0 sm:$0xff] }
  0x29   :  { %201 = vmatpush3.bf16.msra.mxu0 %v200_v5  ;;  %v152_v35 = vsub.s32 0, %v151_v33 }
  0x2a   :  { %202 = vmatprep.subr.bf16.mxu0 %v266_v0 }
  0x2d   :  { %204 = vmatpush3.bf16.msra.mxu0 %v203_v7 }
  0x30   :  { %197 = vmatmul.mubr.msk.f32.vlgmr.msra.gmra.mrb[0].mxu0 %vm49_vm1, %v41_v8 }
 0x103   :  { %v119_v9 = vpop.f32.mrb[0].mxu0 }
 0x104   :  { %v133_v10 = vmul.f32 %v119_v9, %v119_v9  ;;  %v198_v11 = vpop.f32.mrb[1].mxu0  ;;  %v124_v12 = vsel %vm123_vm2, %v119_v9, 0.0 }
 0x105   :  { %v125_v13 = vrot.slane %v124_v12, 4 }
 0x106   :  { %v134_v14 = vsel %vm123_vm2, %v133_v10, 0.0 }
 0x107   :  { %v126_v15 = vadd.f32 %v125_v13, %v124_v12  ;;  %v135_v16 = vrot.slane %v134_v14, 4 }
 0x109   :  { %v127_v17 = vrot.slane %v126_v15, 2  ;;  %v136_v18 = vadd.f32 %v135_v16, %v134_v14 }
 0x10b   :  { %v128_v19 = vadd.f32 %v127_v17, %v126_v15  ;;  %v137_v20 = vrot.slane %v136_v18, 2 }
 0x10d   :  { %v129_v21 = vrot.slane %v128_v19, 1  ;;  %v138_v22 = vadd.f32 %v137_v20, %v136_v18 }
 0x10f   :  { %v130_v23 = vadd.f32 %v129_v21, %v128_v19  ;;  %v139_v24 = vrot.slane %v138_v22, 1 }
 0x111   :  { %v132_v25 = vmul.f32 0.125, %v130_v23  ;;  %v140_v26 = vadd.f32 %v139_v24, %v138_v22 }
 0x113   :  { %v141_v27 = vmul.f32 0.125, %v140_v26  ;;  %v142_v28 = vmul.f32 %v132_v25, %v132_v25 }
 0x115   :  { %v143_v29 = vsub.f32 %v141_v27, %v142_v28 }
 0x117   :  { %v144_v30 = vmax.f32 %v143_v29, 0.0 }
 0x119   :  { %v145_v31 = vadd.f32 1e-05, %v144_v30 }
 0x11b   :  { %212 = vrsqrt.f32 %v145_v31 }
 0x125   :  { %v213_v36 = vpop.eup %212 }
 0x126   :  { %v147_v37 = vmul.f32 %v213_v36, %v46_v34 }
 0x128   :  { %v148_v39 = vmul.f32 %v147_v37, %v132_v25  ;;  %v153_v40 = vrot.slane %v147_v37, %v152_v35 }
 0x12a   :  { %v149_v41 = vsub.f32 %v47_v38, %v148_v39  ;;  %v154_v42 = vmul.f32 %v153_v40, %v119_v9 }
 0x12c   :  { %v158_v43 = vrot.slane %v149_v41, %v152_v35 }
 0x12e   :  { %v159_v44 = vadd.f32 %v158_v43, %v154_v42 }
 0x130   :  { %v160_v46 = vmax.f32 %v159_v44, 0.0 }
 0x132   :  { %v166_v47 = vmul.f32 %v182_v45, %v160_v46 }
 0x134   :  { %v167_v48 = vsel %vm123_vm2, %v166_v47, 0.0 }
 0x135   :  { %168 = vadd.xlane.f32.xlu0 %v167_v48 }
 0x1c2   :  { %v169_v50 = vpop.xlane.xlu0 %168 }
 0x1c3   :  { %v171_v51 = vadd.f32 %v170_v49, %v169_v50 }
 0x1c5   :  { %v172_v52 = vmax.f32 %v171_v51, 0.0 }
 0x1c7   :  { %174 = vst.msk [vmem:[%s332_s3] sm:$0xff] %vm173_vm3, %v172_v52 }
 0x1c8   :  { %179 = vsyncpa [#allocation4], 1 }
 0x1c9   :  { %180 = vsyncpa [#allocation6], 1 }

</bundles_post_ra>
